<compile_context>
chip_gen: v5e
topology: v5e:2x2
jax: 0.10.0
libtpu: 0.0.40
codegen_flags: <defaults>
</compile_context>

<pallas_src>
import functools

import jax
import jax.numpy as jnp
from jax import lax
from jax.experimental import pallas as pl
from jax.experimental.pallas import tpu as pltpu

DICE_WEIGHT = 0.2
BCE_WEIGHT = 0.9
DICE_SMOOTH = 0.0
DICE_EPS = 1e-7
LOG_CLAMP = -100.0           # nn.BCELoss clamps log terms at -100
PAD_LOGIT = -1e4             # sentinel: sigmoid==0 and bce==0 -> padding adds 0 to all sums

LANES = 128
CHUNK_ROWS = 128             # inner-loop chunk: (128,128) f32 temporaries = 64 KiB each
TARGET_TILE_BYTES = 2 << 20  # 2 MiB per input per grid step (DMA granularity)


def _round_up(a, b):
    return (a + b - 1) // b * b


def _multicore_hint():
    """Best-effort: True if one device spans >1 TensorCore (v4/v5p megacore, v7x)."""
    try:
        kind = jax.devices()[0].device_kind.lower()
    except Exception:
        return True
    single_core_tags = ("v2", "v3", "v5e", "v5 lite", "v5lite", "v6e", "v6 lite", "v6lite")
    return not any(tag in kind for tag in single_core_tags)


def _loss_sums_kernel(logit_ref, target_ref, acc_ref, *, chunk_rows, n_chunks):
    i = pl.program_id(1)

    @pl.when(i == 0)
    def _():
        acc_ref[...] = jnp.zeros_like(acc_ref)

    def fold(v):
        # (chunk_rows, 128) -> (8, 128): vreg-wise VPU adds, no cross-lane work.
        return jnp.sum(v.reshape(chunk_rows // 8, 8, LANES), axis=0)

    def body(c, carry):
        a_pt, a_ppt, a_bce = carry
        r0 = pl.multiple_of(c * chunk_rows, chunk_rows)
        x = logit_ref[pl.ds(r0, chunk_rows), :].astype(jnp.float32)
        t = target_ref[pl.ds(r0, chunk_rows), :].astype(jnp.float32)

        # Clip reproduces nn-style per-term -100 log clamps exactly and keeps exp/log
        # in a safe range; sigmoid is unaffected (it saturates far before +-100).
        xc = jnp.clip(x, LOG_CLAMP, -LOG_CLAMP)

        e = jnp.exp(-jnp.abs(xc))               # EUP
        d = 1.0 + e
        s = jnp.log(d)                          # EUP: log(1 + exp(-|x|))
        inv = pl.reciprocal(d, approx=True)     # EUP vrcp ...
        inv = inv * (2.0 - d * inv)             # ... + one Newton step -> ~f32 accurate
        p = jnp.where(xc >= 0, inv, e * inv)        # sigmoid(x)
        bce = s + jnp.maximum(xc, 0.0) - xc * t     # fused BCE-with-logits

        return (a_pt + fold(p * t), a_ppt + fold(p + t), a_bce + fold(bce))

    zero = jnp.zeros((8, LANES), jnp.float32)
    s_pt, s_ppt, s_bce = lax.fori_loop(0, n_chunks, body, (zero, zero, zero))

    acc_ref[0:8, :] += s_pt
    acc_ref[8:16, :] += s_ppt
    acc_ref[16:24, :] += s_bce


def mixed_dice_bce_loss(logit, target):
    """logit, target: same-shape arrays (e.g. NCHW). Returns scalar f32 loss."""
    assert logit.shape == target.shape
    n_elem = logit.size
    assert n_elem > 0

    isz_l = jnp.dtype(logit.dtype).itemsize
    isz_t = jnp.dtype(target.dtype).itemsize
    sublane_pack = max(8, 32 // max(1, min(isz_l, isz_t)))  # 8 f32 / 16 bf16 / 32 int8
    max_tile_rows = max(
        CHUNK_ROWS,
        (TARGET_TILE_BYTES // (LANES * max(isz_l, isz_t))) // CHUNK_ROWS * CHUNK_ROWS)

    rows = pl.cdiv(n_elem, LANES)
    n_split = 2 if (rows >= 2 * max_tile_rows and _multicore_hint()) else 1
    rows_split = pl.cdiv(rows, n_split)

    if rows_split <= CHUNK_ROWS:
        chunk_rows = _round_up(rows_split, sublane_pack)
        tile_rows = chunk_rows
        steps = 1
    else:
        chunk_rows = CHUNK_ROWS
        steps = pl.cdiv(rows_split, max_tile_rows)
        tile_rows = _round_up(pl.cdiv(rows_split, steps), chunk_rows)
    rows_per_split = steps * tile_rows
    padded_elems = n_split * rows_per_split * LANES

    def to_slab(a, pad_value):
        flat = a.reshape(-1)
        if padded_elems != n_elem:
            flat = jnp.pad(flat, (0, padded_elems - n_elem), constant_values=pad_value)
        return flat.reshape(n_split, rows_per_split, LANES)

    # Sentinel padding: sigmoid(PAD_LOGIT)==0 and bce(PAD_LOGIT, 0)==0, so padded
    # elements contribute exactly nothing to any of the three running sums.
    logit3d = to_slab(logit, PAD_LOGIT)
    target3d = to_slab(target, 0)

    in_spec = pl.BlockSpec((None, tile_rows, LANES), lambda c, i: (c, i, 0))
    acc_spec = pl.BlockSpec((None, 24, LANES), lambda c, i: (c, 0, 0))

    kernel = functools.partial(
        _loss_sums_kernel, chunk_rows=chunk_rows, n_chunks=tile_rows // chunk_rows)

    cost = pl.CostEstimate(
        flops=20 * n_elem,
        transcendentals=3 * n_elem,
        bytes_accessed=n_elem * (isz_l + isz_t) + n_split * 24 * LANES * 4,
    )

    acc = pl.pallas_call(
        kernel,
        out_shape=jax.ShapeDtypeStruct((n_split, 24, LANES), jnp.float32),
        grid_spec=pltpu.PrefetchScalarGridSpec(
            num_scalar_prefetch=0,
            grid=(n_split, steps),
            in_specs=[in_spec, in_spec],
            out_specs=acc_spec,
        ),
        compiler_params=pltpu.CompilerParams(
            # "parallel" is the megacore-sharding hint for the split axis (v4/v5p/v7x);
            # it is harmless (size-1 / serialized) on single-core chips.
            dimension_semantics=("parallel", "arbitrary"),
        ),
        cost_estimate=cost,
    )(logit3d, target3d)

    # Tiny cross-lane reduction of the (n_split, 3*8, 128) partials + scalar combine:
    # plain-JAX glue (it also merges the per-core splits, which the kernel cannot).
    sums = jnp.sum(acc.reshape(n_split, 3, 8, LANES), axis=(0, 2, 3))
    sum_pt, sum_p_plus_t, sum_bce = sums[0], sums[1], sums[2]

    dice = 1.0 - (2.0 * sum_pt + DICE_SMOOTH) / (sum_p_plus_t + DICE_SMOOTH + DICE_EPS)
    bce_mean = sum_bce / jnp.float32(n_elem)
    return DICE_WEIGHT * dice + BCE_WEIGHT * bce_mean


def _reference_loss(logit, target):
    # Mirrors the PyTorch module: sigmoid -> dice + nn.BCELoss (log clamped at -100).
    p = jax.nn.sigmoid(logit.astype(jnp.float32))
    t = target.astype(jnp.float32)
    dice = 1.0 - (2.0 * jnp.sum(p * t) + DICE_SMOOTH) / (
        jnp.sum(p) + jnp.sum(t) + DICE_SMOOTH + DICE_EPS)
    log_p = jnp.maximum(jnp.log(p), LOG_CLAMP)
    log_1mp = jnp.maximum(jnp.log(1.0 - p), LOG_CLAMP)
    bce = jnp.mean(-(t * log_p + (1.0 - t) * log_1mp))
    return DICE_WEIGHT * dice + BCE_WEIGHT * bce


if __name__ == "__main__":
    key = jax.random.PRNGKey(0)
    k1, k2 = jax.random.split(key)

    # Segmentation-style NCHW inputs: (2, 4, 16, 16)
    shape = (2, 4, 16, 16)
    logit = jax.random.normal(k1, shape, dtype=jnp.float32) * 2.0
    target = jax.random.bernoulli(k2, 0.3, shape).astype(jnp.float32)

    loss = jax.block_until_ready(mixed_dice_bce_loss(logit, target))
    ref = jax.block_until_ready(_reference_loss(logit, target))
    # 2e-5 tolerance covers the EUP approximate reciprocal (+1 Newton step) and the
    # different summation order of the tiled reduction.
    assert jnp.allclose(loss, ref, rtol=2e-5, atol=2e-5), (loss, ref)

    print("KERNEL_OK")
</pallas_src>

<mosaic_0001>
module attributes {stable_mosaic.version = 11 : i64} {
  func.func @_loss_sums_kernel(%arg0: i32, %arg1: i32, %arg2: memref<1x16x128xf32, #tpu.memory_space<vmem>>, %arg3: memref<1x16x128xf32, #tpu.memory_space<vmem>>, %arg4: memref<1x24x128xf32, #tpu.memory_space<vmem>>) attributes {dimension_semantics = [#tpu.dimension_semantics<parallel>, #tpu.dimension_semantics<arbitrary>], iteration_bounds = array<i64: 1, 1>, scalar_prefetch = 0 : i64, scratch_operands = 0 : i64, tpu.core_type = #tpu.core_type<tc>, window_params = [{transform_indices = @transform_0, window_bounds = array<i64: 1, 16, 128>}, {transform_indices = @transform_1, window_bounds = array<i64: 1, 16, 128>}, {transform_indices = @transform_2, window_bounds = array<i64: 1, 24, 128>}]} {
    %c0_i32 = arith.constant 0 : i32
    %0 = arith.cmpi eq, %arg1, %c0_i32 : i32
    %1 = arith.extui %0 : i1 to i32
    %c0_i32_0 = arith.constant 0 : i32
    %2 = arith.cmpi ne, %1, %c0_i32_0 : i32
    scf.if %2 {
      %cst_31 = arith.constant 0.000000e+00 : f32
      %66 = vector.broadcast %cst_31 : f32 to vector<24x128xf32>
      %c0_32 = arith.constant 0 : index
      %c0_33 = arith.constant 0 : index
      %c0_34 = arith.constant 0 : index
      %67 = vector.load %arg4[%c0_32, %c0_33, %c0_34] : memref<1x24x128xf32, #tpu.memory_space<vmem>>, vector<1x24x128xf32>
      %68 = vector.shape_cast %67 : vector<1x24x128xf32> to vector<24x128xf32>
      %69 = vector.shape_cast %66 : vector<24x128xf32> to vector<1x24x128xf32>
      tpu.vector_store %arg4[%c0_32, %c0_33, %c0_34], %69 {strides = array<i32>} : memref<1x24x128xf32, #tpu.memory_space<vmem>>, vector<1x24x128xf32>,
    } else {
    }
    %cst = arith.constant 0.000000e+00 : f32
    %3 = vector.broadcast %cst : f32 to vector<8x128xf32>
    %c0_i32_1 = arith.constant 0 : i32
    %c16_i32 = arith.constant 16 : i32
    %4 = arith.muli %c0_i32_1, %c16_i32 : i32
    %5 = tpu.assume_multiple %4, 16 : i32
    %c0 = arith.constant 0 : index
    %6 = arith.index_cast %5 : i32 to index
    %c0_2 = arith.constant 0 : index
    %7 = vector.load %arg2[%c0, %6, %c0_2] : memref<1x16x128xf32, #tpu.memory_space<vmem>>, vector<1x16x128xf32>
    %8 = vector.shape_cast %7 : vector<1x16x128xf32> to vector<16x128xf32>
    %c0_3 = arith.constant 0 : index
    %9 = arith.index_cast %5 : i32 to index
    %c0_4 = arith.constant 0 : index
    %10 = vector.load %arg3[%c0_3, %9, %c0_4] : memref<1x16x128xf32, #tpu.memory_space<vmem>>, vector<1x16x128xf32>
    %11 = vector.shape_cast %10 : vector<1x16x128xf32> to vector<16x128xf32>
    %cst_5 = arith.constant -1.000000e+02 : f32
    %cst_6 = arith.constant 1.000000e+02 : f32
    %12 = vector.broadcast %cst_5 : f32 to vector<16x128xf32>
    %13 = arith.maximumf %12, %8 : vector<16x128xf32>
    %14 = vector.broadcast %cst_6 : f32 to vector<16x128xf32>
    %15 = arith.minimumf %14, %13 : vector<16x128xf32>
    %16 = math.absf %15 : vector<16x128xf32>
    %cst_7 = arith.constant 0.000000e+00 : f32
    %17 = vector.broadcast %cst_7 : f32 to vector<16x128xf32>
    %18 = arith.subf %17, %16 : vector<16x128xf32>
    %19 = math.exp %18 : vector<16x128xf32>
    %cst_8 = arith.constant 1.000000e+00 : f32
    %20 = vector.broadcast %cst_8 : f32 to vector<16x128xf32>
    %21 = arith.addf %20, %19 : vector<16x128xf32>
    %22 = math.log %21 : vector<16x128xf32>
    %23 = tpu.reciprocal %21 {approx = true} : vector<16x128xf32> -> vector<16x128xf32>
    %24 = arith.mulf %21, %23 : vector<16x128xf32>
    %cst_9 = arith.constant 2.000000e+00 : f32
    %25 = vector.broadcast %cst_9 : f32 to vector<16x128xf32>
    %26 = arith.subf %25, %24 : vector<16x128xf32>
    %27 = arith.mulf %23, %26 : vector<16x128xf32>
    %cst_10 = arith.constant 0.000000e+00 : f32
    %28 = vector.broadcast %cst_10 : f32 to vector<16x128xf32>
    %29 = arith.cmpf oge, %15, %28 : vector<16x128xf32>
    %30 = arith.mulf %19, %27 : vector<16x128xf32>
    %31 = arith.select %29, %27, %30 : vector<16x128xi1>, vector<16x128xf32>
    %cst_11 = arith.constant 0.000000e+00 : f32
    %32 = vector.broadcast %cst_11 : f32 to vector<16x128xf32>
    %33 = arith.maximumf %15, %32 : vector<16x128xf32>
    %34 = arith.addf %22, %33 : vector<16x128xf32>
    %35 = arith.mulf %15, %11 : vector<16x128xf32>
    %36 = arith.subf %34, %35 : vector<16x128xf32>
    %37 = arith.mulf %31, %11 : vector<16x128xf32>
    %38 = vector.shape_cast %37 : vector<16x128xf32> to vector<2x8x128xf32>
    %cst_12 = arith.constant dense<0.000000e+00> : vector<8x128xf32>
    %39 = vector.multi_reduction <add>, %38, %cst_12 [0] : vector<2x8x128xf32> to vector<8x128xf32>
    %40 = arith.addf %3, %39 : vector<8x128xf32>
    %41 = arith.addf %31, %11 : vector<16x128xf32>
    %42 = vector.shape_cast %41 : vector<16x128xf32> to vector<2x8x128xf32>
    %cst_13 = arith.constant dense<0.000000e+00> : vector<8x128xf32>
    %43 = vector.multi_reduction <add>, %42, %cst_13 [0] : vector<2x8x128xf32> to vector<8x128xf32>
    %44 = arith.addf %3, %43 : vector<8x128xf32>
    %45 = vector.shape_cast %36 : vector<16x128xf32> to vector<2x8x128xf32>
    %cst_14 = arith.constant dense<0.000000e+00> : vector<8x128xf32>
    %46 = vector.multi_reduction <add>, %45, %cst_14 [0] : vector<2x8x128xf32> to vector<8x128xf32>
    %47 = arith.addf %3, %46 : vector<8x128xf32>
    %c1_i32 = arith.constant 1 : i32
    %c0_15 = arith.constant 0 : index
    %c0_16 = arith.constant 0 : index
    %c0_17 = arith.constant 0 : index
    %48 = vector.load %arg4[%c0_15, %c0_16, %c0_17] : memref<1x24x128xf32, #tpu.memory_space<vmem>>, vector<1x8x128xf32>
    %49 = vector.shape_cast %48 : vector<1x8x128xf32> to vector<8x128xf32>
    %50 = arith.addf %49, %40 : vector<8x128xf32>
    %c0_18 = arith.constant 0 : index
    %c0_19 = arith.constant 0 : index
    %c0_20 = arith.constant 0 : index
    %51 = vector.load %arg4[%c0_18, %c0_19, %c0_20] : memref<1x24x128xf32, #tpu.memory_space<vmem>>, vector<1x8x128xf32>
    %52 = vector.shape_cast %51 : vector<1x8x128xf32> to vector<8x128xf32>
    %53 = vector.shape_cast %50 : vector<8x128xf32> to vector<1x8x128xf32>
    tpu.vector_store %arg4[%c0_18, %c0_19, %c0_20], %53 {strides = array<i32>} : memref<1x24x128xf32, #tpu.memory_space<vmem>>, vector<1x8x128xf32>,
    %c0_21 = arith.constant 0 : index
    %c8 = arith.constant 8 : index
    %c0_22 = arith.constant 0 : index
    %54 = vector.load %arg4[%c0_21, %c8, %c0_22] : memref<1x24x128xf32, #tpu.memory_space<vmem>>, vector<1x8x128xf32>
    %55 = vector.shape_cast %54 : vector<1x8x128xf32> to vector<8x128xf32>
    %56 = arith.addf %55, %44 : vector<8x128xf32>
    %c0_23 = arith.constant 0 : index
    %c8_24 = arith.constant 8 : index
    %c0_25 = arith.constant 0 : index
    %57 = vector.load %arg4[%c0_23, %c8_24, %c0_25] : memref<1x24x128xf32, #tpu.memory_space<vmem>>, vector<1x8x128xf32>
    %58 = vector.shape_cast %57 : vector<1x8x128xf32> to vector<8x128xf32>
    %59 = vector.shape_cast %56 : vector<8x128xf32> to vector<1x8x128xf32>
    tpu.vector_store %arg4[%c0_23, %c8_24, %c0_25], %59 {strides = array<i32>} : memref<1x24x128xf32, #tpu.memory_space<vmem>>, vector<1x8x128xf32>,
    %c0_26 = arith.constant 0 : index
    %c16 = arith.constant 16 : index
    %c0_27 = arith.constant 0 : index
    %60 = vector.load %arg4[%c0_26, %c16, %c0_27] : memref<1x24x128xf32, #tpu.memory_space<vmem>>, vector<1x8x128xf32>
    %61 = vector.shape_cast %60 : vector<1x8x128xf32> to vector<8x128xf32>
    %62 = arith.addf %61, %47 : vector<8x128xf32>
    %c0_28 = arith.constant 0 : index
    %c16_29 = arith.constant 16 : index
    %c0_30 = arith.constant 0 : index
    %63 = vector.load %arg4[%c0_28, %c16_29, %c0_30] : memref<1x24x128xf32, #tpu.memory_space<vmem>>, vector<1x8x128xf32>
    %64 = vector.shape_cast %63 : vector<1x8x128xf32> to vector<8x128xf32>
    %65 = vector.shape_cast %62 : vector<8x128xf32> to vector<1x8x128xf32>
    tpu.vector_store %arg4[%c0_28, %c16_29, %c0_30], %65 {strides = array<i32>} : memref<1x24x128xf32, #tpu.memory_space<vmem>>, vector<1x8x128xf32>,
    return
  }
  func.func @transform_0(%arg0: i32, %arg1: i32) -> (i32, i32, i32) {
    %c0_i32 = arith.constant 0 : i32
    %c0_i32_0 = arith.constant 0 : i32
    return %arg0, %arg1, %c0_i32 : i32, i32, i32
  }
  func.func @transform_1(%arg0: i32, %arg1: i32) -> (i32, i32, i32) {
    %c0_i32 = arith.constant 0 : i32
    %c0_i32_0 = arith.constant 0 : i32
    return %arg0, %arg1, %c0_i32 : i32, i32, i32
  }
  func.func @transform_2(%arg0: i32, %arg1: i32) -> (i32, i32, i32) {
    %c0_i32 = arith.constant 0 : i32
    %c0_i32_0 = arith.constant 0 : i32
    %c0_i32_1 = arith.constant 0 : i32
    return %arg0, %c0_i32, %c0_i32_0 : i32, i32, i32
  }
}

</mosaic_0001>

<bundles_post_ra>
// kernel: tpu_custom_call.1
= control target key start
LH: loop header
LB: loop body
LE: loop exit
PB: predicated region body
PF: predicated region fallthrough
CT: control target
= control target key end

     0   :  { %7 = vsyncpa [#allocation3], 0  ;;  %s270_s0 = inlined_call_operand.hbm [shape: f32[1,16,128], index: 0, kind: input, shape index: {}]   ;;  %s271_s1 = inlined_call_operand.hbm [shape: f32[1,16,128], index: 1, kind: input, shape index: {}]   ;;  %s272_s2 = inlined_call_operand.hbm [shape: f32[1,24,128], index: 2, kind: output, shape index: {}]  }
   0x1   :  { %8 = vsyncpa [#allocation6], 0 }
   0x2   :  { %9 = vsyncpa [#allocation4], 0  ;;  %s14_s11 = sshll.u32 %s270_s0, 4  ;;  %s232_s12 = smov [#allocation2]   ;;  %s15_s11 = int_to_ptr.hbm [resolvable:$true] %s14_s11 }
   0x3   :  { %s16_s13 = sshll.u32 %s232_s12, 4  ;;  %s27_s16 = sshll.u32 %s271_s1, 4  ;;  %s17_s13 = int_to_ptr.vmem [resolvable:$true] %s16_s13  ;;  %s28_s16 = int_to_ptr.hbm [resolvable:$true] %s27_s16 }
   0x4   :  { %s233_s17 = smov 128   ;;  %s234_s18 = smov 8  }
   0x5   :  { %22 = dma.hbm_to_vmem [thread:$0]  %s15_s11, 256, %s17_s13, [#allocation3], %s233_s17, %s233_s17, %s234_s18  }
   0x6   :  { %s235_s19 = smov [#allocation5]  }
   0x7   :  { %s29_s20 = sshll.u32 %s235_s19, 4  ;;  %s30_s20 = int_to_ptr.vmem [resolvable:$true] %s29_s20 }
   0x8   :  { %35 = dma.hbm_to_vmem [thread:$0]  %s28_s16, 256, %s30_s20, [#allocation6], %s233_s17, %s233_s17, %s234_s18  }
   0x9   :  { %226 = dma.done.wait [#allocation3], 256  }
   0xa   :  { %227 = vsyncadd [#allocation3], 4294967040 }
   0xb   :  { %228 = dma.done.wait [#allocation6], 256  }
   0xc   :  { %229 = vsyncadd [#allocation6], 4294967040  ;;  %v51_v0 = vld [vmem:[#allocation2] sm:$0xff]  ;;  %v52_v1 = vld [vmem:[#allocation2 + $0x8] sm:$0xff]  ;;  %s236_s0 = smov [#allocation7]   ;;  %s120_s23 = sshll.u32 %s272_s2, 4  ;;  %s121_s23 = int_to_ptr.hbm [resolvable:$true] %s120_s23 }
   0xd   :  { %v134_v2 = vclamps-f32 %v51_v0, 100.0  ;;  %v135_v3 = vclamps-f32 %v52_v1, 100.0  ;;  %v53_v15 = vld [vmem:[#allocation5] sm:$0xff]  ;;  %v54_v17 = vld [vmem:[#allocation5 + $0x8] sm:$0xff]  ;;  %s118_s1 = sshll.u32 %s236_s0, 4  ;;  %s119_s1 = int_to_ptr.vmem [resolvable:$true] %s118_s1 }
   0xf   :  { %v59_v4 = vand.u32 2147483647, %v134_v2  ;;  %v60_v5 = vand.u32 2147483647, %v135_v3  ;;  %v87_v19 = vmax.f32 %v134_v2, 0.0  ;;  %v88_v22 = vmax.f32 %v135_v3, 0.0 }
  0x10   :  { %v91_v26 = vmul.f32 %v134_v2, %v53_v15  ;;  %v92_v29 = vmul.f32 %v135_v3, %v54_v17  ;;  %vm81_vm0 = vcmp.ge.f32.partialorder %v134_v2, 0.0  ;;  %vm82_vm1 = vcmp.ge.f32.partialorder %v135_v3, 0.0 }
  0x11   :  { %v61_v6 = vsub.f32 0.0, %v59_v4  ;;  %v62_v7 = vsub.f32 0.0, %v60_v5 }
  0x13   :  { %v63_v8 = vmul.f32 1.442695, %v61_v6  ;;  %v65_v9 = vmul.f32 1.442695, %v62_v7 }
  0x15   :  { %142 = vpow2.f32 %v63_v8 }
  0x16   :  { %144 = vpow2.f32 %v65_v9 }
  0x1b   :  { %v143_v10 = vpop.eup %142 }
  0x1c   :  { %v145_v11 = vpop.eup %144  ;;  %v67_v12 = vadd.f32 1.0, %v143_v10 }
  0x1d   :  { %v68_v13 = vadd.f32 1.0, %v145_v11 }
  0x1e   :  { %146 = vrcp.f32 %v67_v12 }
  0x1f   :  { %148 = vrcp.f32 %v68_v13 }
  0x20   :  { %150 = vlog2.f32 %v67_v12 }
  0x21   :  { %152 = vlog2.f32 %v68_v13 }
  0x24   :  { %v147_v14 = vpop.eup %146 }
  0x25   :  { %v149_v16 = vpop.eup %148  ;;  %v75_v18 = vmul.f32 %v147_v14, %v67_v12 }
  0x26   :  { %v151_v20 = vpop.eup %150  ;;  %v76_v21 = vmul.f32 %v149_v16, %v68_v13 }
  0x27   :  { %v153_v23 = vpop.eup %152  ;;  %v77_v24 = vsub.f32 2.0, %v75_v18  ;;  %v70_v25 = vmul.f32 0.6931472, %v151_v20 }
  0x28   :  { %v78_v27 = vsub.f32 2.0, %v76_v21  ;;  %v72_v28 = vmul.f32 0.6931472, %v153_v23 }
  0x29   :  { %v79_v30 = vmul.f32 %v147_v14, %v77_v24  ;;  %v89_v31 = vadd.f32 %v87_v19, %v70_v25 }
  0x2a   :  { %v80_v32 = vmul.f32 %v149_v16, %v78_v27  ;;  %v90_v33 = vadd.f32 %v88_v22, %v72_v28 }
  0x2b   :  { %v83_v34 = vmul.f32 %v143_v10, %v79_v30  ;;  %v93_v35 = vsub.f32 %v89_v31, %v91_v26 }
  0x2c   :  { %v84_v36 = vmul.f32 %v145_v11, %v80_v32  ;;  %v94_v37 = vsub.f32 %v90_v33, %v92_v29 }
  0x2d   :  { %v85_v38 = vsel %vm81_vm0, %v79_v30, %v83_v34 }
  0x2e   :  { %v86_v39 = vsel %vm82_vm1, %v80_v32, %v84_v36  ;;  %v95_v40 = vmul.f32 %v85_v38, %v53_v15  ;;  %v99_v41 = vadd.f32 %v85_v38, %v53_v15  ;;  %v103_v42 = vadd.f32 %v94_v37, %v93_v35 }
  0x2f   :  { %v96_v43 = vmul.f32 %v86_v39, %v54_v17  ;;  %v100_v44 = vadd.f32 %v86_v39, %v54_v17 }
  0x30   :  { %113 = vst [vmem:[#allocation7 + $0x10] sm:$0xff] %v103_v42 }
  0x31   :  { %v97_v45 = vadd.f32 %v96_v43, %v95_v40  ;;  %v101_v46 = vadd.f32 %v100_v44, %v99_v41 }
  0x33   :  { %107 = vst [vmem:[#allocation7] sm:$0xff] %v97_v45 }
  0x34   :  { %110 = vst [vmem:[#allocation7 + $0x8] sm:$0xff] %v101_v46 }
  0x35   :  { %126 = dma.vmem_to_hbm [thread:$0]  %s119_s1, 384, %s121_s23, [#allocation4], %s233_s17, %s233_s17, %s234_s18  }
  0x36   :  { %230 = dma.done.wait [#allocation4], 384  }
  0x37   :  { %231 = vsyncadd [#allocation4], 4294966912 }
  0x38   :  { %131 = vsyncpa [#allocation3], 1 }
  0x39   :  { %132 = vsyncpa [#allocation6], 1 }
  0x3a   :  { %133 = vsyncpa [#allocation4], 1 }

</bundles_post_ra>
